<compile_context>
chip_gen: v7x
topology: tpu7x:2x2x1
jax: 0.10.0
libtpu: 0.0.40
codegen_flags: <defaults>
</compile_context>

<pallas_src>
import functools

import jax
import jax.numpy as jnp
from jax.experimental import pallas as pl
from jax.experimental.pallas import tpu as pltpu

SUBLANE = 8
VMEM_LIMIT = 32 * 1024 * 1024        # scoped-VMEM request per pallas_call
RESIDENT_BUDGET = 16 * 1024 * 1024   # gate for the single-kernel resident path (v7x-safe)
TILE_BUDGET = 16 * 1024 * 1024       # per-step tile budget for the tiled path
TB_MAX = 2048                        # default max batch-tile rows


def _round_up(n, m):
    return ((n + m - 1) // m) * m


def _cdiv(a, b):
    return (a + b - 1) // b


# ----------------------------------------------------------------------------
# Kernels
# ----------------------------------------------------------------------------
def _resident_bn_kernel(*refs, num_hidden, rows, rows_padded, eps, compute_dtype):
    """Whole BN forward in one kernel; activations stay in VMEM/vregs.

    refs = x, (W_i, gamma_i, beta_i) * num_hidden, W_out, b_out, out
    """
    x_ref = refs[0]
    out_ref = refs[-1]
    p = refs[1:-1]
    w_out_ref, b_out_ref = p[-2], p[-1]

    need_mask = rows_padded != rows
    if need_mask:
        row = jax.lax.broadcasted_iota(jnp.int32, (rows_padded, 1), 0)
        valid = row < rows
    inv_rows = 1.0 / rows

    h = x_ref[...].astype(compute_dtype)
    for i in range(num_hidden):
        w_ref, g_ref, bt_ref = p[3 * i], p[3 * i + 1], p[3 * i + 2]
        z = jnp.dot(h, w_ref[...], preferred_element_type=jnp.float32)
        zm = jnp.where(valid, z, 0.0) if need_mask else z
        # TODO(synk): E[z^2]-mean^2 can cancel for large |mean|/std; Welford if needed.
        mean = jnp.sum(zm, axis=0, keepdims=True) * inv_rows
        var = jnp.maximum(
            jnp.sum(zm * zm, axis=0, keepdims=True) * inv_rows - mean * mean, 0.0)
        invstd = jax.lax.rsqrt(var + eps)          # EUP
        scale = g_ref[...] * invstd
        shift = bt_ref[...] - mean * scale
        h = jnp.maximum(z * scale + shift, 0.0).astype(compute_dtype)

    out = jnp.dot(h, w_out_ref[...], preferred_element_type=jnp.float32) + b_out_ref[...]
    out_ref[...] = out.astype(out_ref.dtype)


def _tiled_hidden_kernel(*refs, first, rows, tb, eps, compute_dtype):
    """One hidden layer of the tiled BN path.

    Consumes the previous layer's z tile and (n_steps,1,H) partial sums, finalizes
    mean/invstd, normalizes + affine + ReLU, runs the next matmul, writes z in
    compute_dtype and this step's own partial sum / sum-of-squares.
    """
    if first:
        x_ref, w_ref, z_ref, s_ref, ss_ref = refs
        h = x_ref[...].astype(compute_dtype)
    else:
        zp_ref, sp_ref, ssp_ref, g_ref, bt_ref, w_ref, z_ref, s_ref, ss_ref = refs
        inv_rows = 1.0 / rows
        mean = jnp.sum(sp_ref[...], axis=0) * inv_rows            # (1, d_in)
        var = jnp.maximum(jnp.sum(ssp_ref[...], axis=0) * inv_rows - mean * mean, 0.0)
        invstd = jax.lax.rsqrt(var + eps)
        scale = g_ref[...] * invstd
        shift = bt_ref[...] - mean * scale
        h = jnp.maximum(zp_ref[...].astype(jnp.float32) * scale + shift, 0.0)
        h = h.astype(compute_dtype)

    z = jnp.dot(h, w_ref[...], preferred_element_type=jnp.float32)
    z_ref[...] = z.astype(z_ref.dtype)                             # bf16 activations

    if rows % tb == 0:                                             # static: no padding rows
        zm = z
    else:
        row = pl.program_id(0) * tb + jax.lax.broadcasted_iota(jnp.int32, (tb, 1), 0)
        zm = jnp.where(row < rows, z, 0.0)
    s_ref[...] = jnp.sum(zm, axis=0, keepdims=True)[None]          # (1,1,d_out)
    ss_ref[...] = jnp.sum(zm * zm, axis=0, keepdims=True)[None]


def _tiled_final_kernel(zp_ref, sp_ref, ssp_ref, g_ref, bt_ref, w_ref, b_ref, o_ref,
                        *, rows, eps, compute_dtype):
    """Finalize last BN stats, normalize + affine + ReLU, final Linear."""
    inv_rows = 1.0 / rows
    mean = jnp.sum(sp_ref[...], axis=0) * inv_rows
    var = jnp.maximum(jnp.sum(ssp_ref[...], axis=0) * inv_rows - mean * mean, 0.0)
    invstd = jax.lax.rsqrt(var + eps)
    scale = g_ref[...] * invstd
    shift = bt_ref[...] - mean * scale
    h = jnp.maximum(zp_ref[...].astype(jnp.float32) * scale + shift, 0.0)
    h = h.astype(compute_dtype)
    o_ref[...] = (jnp.dot(h, w_ref[...], preferred_element_type=jnp.float32)
                  + b_ref[...]).astype(o_ref.dtype)


def _fused_linear_relu_kernel(*refs, num_hidden, compute_dtype):
    """Fully fused [Linear + bias + ReLU] x L -> Linear (no BatchNorm)."""
    x_ref = refs[0]
    out_ref = refs[-1]
    params = refs[1:-1]
    h = x_ref[...].astype(compute_dtype)
    for i in range(num_hidden):
        w, b = params[2 * i][...], params[2 * i + 1][...]
        h = jnp.maximum(jnp.dot(h, w, preferred_element_type=jnp.float32) + b, 0.0)
        h = h.astype(compute_dtype)
    out_ref[...] = (jnp.dot(h, params[-2][...], preferred_element_type=jnp.float32)
                    + params[-1][...]).astype(out_ref.dtype)


# ----------------------------------------------------------------------------
# Wrapper
# ----------------------------------------------------------------------------
def voronoi_forward(x, linear_params, bn_params=None, *, use_batch_norm=True,
                    eps=1e-5, compute_dtype=jnp.bfloat16,
                    tb_max=TB_MAX, force_tiled=False):
    """VoronoiNet forward.

    x: (B, input_dim) f32.
    linear_params: list of (W:(in,out), b:(1,out)); last entry = output layer.
    bn_params: list of (gamma:(1,H), beta:(1,H)) per hidden layer, or None (identity).
    """
    B, in_dim = x.shape
    num_hidden = len(linear_params) - 1
    out_dim = linear_params[-1][0].shape[1]
    widths = [in_dim] + [w.shape[1] for w, _ in linear_params]

    ws = [w.astype(compute_dtype) for w, _ in linear_params]
    bs = [b.reshape(1, -1).astype(jnp.float32) for _, b in linear_params]
    param_bytes = sum(int(w.size) * w.dtype.itemsize for w in ws) \
        + 4 * sum(int(b.size) for b in bs)
    cd_bytes = jnp.dtype(compute_dtype).itemsize
    cp = lambda sem: pltpu.CompilerParams(dimension_semantics=sem,
                                          vmem_limit_bytes=VMEM_LIMIT)

    # ------------------------------------------------------------------ BN path
    if use_batch_norm and num_hidden > 0:
        if bn_params is None:
            bn_params = [(jnp.ones((1, widths[i + 1]), jnp.float32),
                          jnp.zeros((1, widths[i + 1]), jnp.float32))
                         for i in range(num_hidden)]
        gammas = [g.reshape(1, -1).astype(jnp.float32) for g, _ in bn_params]
        betas = [bt.reshape(1, -1).astype(jnp.float32) for _, bt in bn_params]

        # -------- resident single-kernel path (whole batch stays in VMEM) -----
        b_pad8 = _round_up(B, SUBLANE)
        act_row = max(widths[i] + widths[i + 1] for i in range(len(widths) - 1))
        resident_bytes = 3 * b_pad8 * act_row * 4 + param_bytes
        if not force_tiled and resident_bytes <= RESIDENT_BUDGET:
            x_p = jnp.pad(x, ((0, b_pad8 - B), (0, 0)))
            flat = [x_p]
            in_specs = [pl.BlockSpec((b_pad8, in_dim), lambda i: (0, 0))]
            for li in range(num_hidden):
                flat += [ws[li], gammas[li], betas[li]]
                in_specs += [pl.BlockSpec(ws[li].shape, lambda i: (0, 0)),
                             pl.BlockSpec((1, widths[li + 1]), lambda i: (0, 0)),
                             pl.BlockSpec((1, widths[li + 1]), lambda i: (0, 0))]
            flat += [ws[-1], bs[-1]]
            in_specs += [pl.BlockSpec(ws[-1].shape, lambda i: (0, 0)),
                         pl.BlockSpec((1, out_dim), lambda i: (0, 0))]
            kern = functools.partial(_resident_bn_kernel, num_hidden=num_hidden,
                                     rows=B, rows_padded=b_pad8, eps=eps,
                                     compute_dtype=compute_dtype)
            flops = 2 * b_pad8 * sum(widths[i] * widths[i + 1]
                                     for i in range(len(widths) - 1))
            out = pl.pallas_call(
                kern, grid=(1,), in_specs=in_specs,
                out_specs=pl.BlockSpec((b_pad8, out_dim), lambda i: (0, 0)),
                out_shape=jax.ShapeDtypeStruct((b_pad8, out_dim), jnp.float32),
                compiler_params=cp(("arbitrary",)),
                cost_estimate=pl.CostEstimate(
                    flops=flops, transcendentals=num_hidden * widths[1],
                    bytes_accessed=4 * b_pad8 * (in_dim + out_dim) + param_bytes),
            )(*flat)
            return out[:B]

        # -------- tiled multi-kernel fallback (large B) -----------------------
        row_bytes = 3 * 4 * act_row
        tb_cap = min(tb_max, max(SUBLANE, (TILE_BUDGET // row_bytes) // SUBLANE * SUBLANE))
        n_steps = _cdiv(B, tb_cap)
        tb = _round_up(_cdiv(B, n_steps), SUBLANE)   # bounds padding waste to < 8*n_steps rows
        b_pad = n_steps * tb
        x_p = jnp.pad(x, ((0, b_pad - B), (0, 0)))

        def tile_spec(d):
            return pl.BlockSpec((tb, d), lambda i: (i, 0))

        def const_spec(shape):
            nd = len(shape)
            return pl.BlockSpec(shape, lambda i: (0,) * nd)

        def stat_out_spec(d):
            return pl.BlockSpec((1, 1, d), lambda i: (i, 0, 0))

        z = x_p
        s = ss = None
        for li in range(num_hidden):
            d_in, d_out = widths[li], widths[li + 1]
            first = (li == 0)
            kern = functools.partial(_tiled_hidden_kernel, first=first, rows=B,
                                     tb=tb, eps=eps, compute_dtype=compute_dtype)
            if first:
                in_arrays = [z, ws[li]]
                in_specs = [tile_spec(d_in), const_spec((d_in, d_out))]
            else:
                in_arrays = [z, s, ss, gammas[li - 1], betas[li - 1], ws[li]]
                in_specs = [tile_spec(d_in), const_spec((n_steps, 1, d_in)),
                            const_spec((n_steps, 1, d_in)), const_spec((1, d_in)),
                            const_spec((1, d_in)), const_spec((d_in, d_out))]
            z, s, ss = pl.pallas_call(
                kern, grid=(n_steps,), in_specs=in_specs,
                out_specs=(tile_spec(d_out), stat_out_spec(d_out), stat_out_spec(d_out)),
                out_shape=(jax.ShapeDtypeStruct((b_pad, d_out), compute_dtype),
                           jax.ShapeDtypeStruct((n_steps, 1, d_out), jnp.float32),
                           jax.ShapeDtypeStruct((n_steps, 1, d_out), jnp.float32)),
                compiler_params=cp(("parallel",)),   # per-step partial stats -> megacore OK
                cost_estimate=pl.CostEstimate(
                    flops=2 * b_pad * d_in * d_out, transcendentals=d_in,
                    bytes_accessed=b_pad * (d_in * (4 if first else cd_bytes)
                                            + d_out * cd_bytes)
                    + d_in * d_out * cd_bytes + 4 * n_steps * d_out * 4),
            )(*in_arrays)

        d_in, d_out = widths[-2], widths[-1]
        kern = functools.partial(_tiled_final_kernel, rows=B, eps=eps,
                                 compute_dtype=compute_dtype)
        out = pl.pallas_call(
            kern, grid=(n_steps,),
            in_specs=[tile_spec(d_in), const_spec((n_steps, 1, d_in)),
                      const_spec((n_steps, 1, d_in)), const_spec((1, d_in)),
                      const_spec((1, d_in)), const_spec((d_in, d_out)),
                      const_spec((1, d_out))],
            out_specs=tile_spec(d_out),
            out_shape=jax.ShapeDtypeStruct((b_pad, d_out), jnp.float32),
            compiler_params=cp(("parallel",)),
            cost_estimate=pl.CostEstimate(
                flops=2 * b_pad * d_in * d_out, transcendentals=d_in,
                bytes_accessed=b_pad * (d_in * cd_bytes + d_out * 4)
                + d_in * d_out * cd_bytes),
        )(z, s, ss, gammas[-1], betas[-1], ws[-1], bs[-1])
        return out[:B]

    # -------------------------------------------------------------- no-BN path
    act_row = max(widths[i] + widths[i + 1] for i in range(len(widths) - 1))
    row_bytes = 3 * 4 * act_row
    tb_cap = min(tb_max, max(SUBLANE, (TILE_BUDGET // row_bytes) // SUBLANE * SUBLANE))
    n_steps = _cdiv(B, tb_cap)
    tb = _round_up(_cdiv(B, n_steps), SUBLANE)
    b_pad = n_steps * tb
    x_p = jnp.pad(x, ((0, b_pad - B), (0, 0)))

    flat = [x_p]
    in_specs = [pl.BlockSpec((tb, in_dim), lambda i: (i, 0))]
    for li in range(len(linear_params)):
        flat += [ws[li], bs[li]]
        in_specs += [pl.BlockSpec(ws[li].shape, lambda i: (0, 0)),
                     pl.BlockSpec((1, widths[li + 1]), lambda i: (0, 0))]
    kern = functools.partial(_fused_linear_relu_kernel, num_hidden=num_hidden,
                             compute_dtype=compute_dtype)
    flops = 2 * b_pad * sum(widths[i] * widths[i + 1] for i in range(len(widths) - 1))
    out = pl.pallas_call(
        kern, grid=(n_steps,), in_specs=in_specs,
        out_specs=pl.BlockSpec((tb, out_dim), lambda i: (i, 0)),
        out_shape=jax.ShapeDtypeStruct((b_pad, out_dim), jnp.float32),
        compiler_params=cp(("parallel",)),
        cost_estimate=pl.CostEstimate(
            flops=flops, transcendentals=0,
            bytes_accessed=4 * b_pad * (in_dim + out_dim) + param_bytes),
    )(*flat)
    return out[:B]


# ----------------------------------------------------------------------------
# Deterministic parameter construction (mirrors VoronoiNet.__init__ shapes)
# ----------------------------------------------------------------------------
def make_params(key, input_dim, hidden, num_layers, output_dim):
    linear = []
    current_dim = input_dim
    for _ in range(num_layers):
        key, wk = jax.random.split(key)
        std = (2.0 / (current_dim + hidden)) ** 0.5         # xavier_normal_
        w = jax.random.normal(wk, (current_dim, hidden), jnp.float32) * std
        b = jnp.zeros((1, hidden), jnp.float32)              # zeros_ bias
        linear.append((w, b))
        current_dim = hidden
    key, wk, bk = jax.random.split(key, 3)                    # default Linear init
    bound = 1.0 / (current_dim ** 0.5)
    w = jax.random.uniform(wk, (current_dim, output_dim), jnp.float32, -bound, bound)
    b = jax.random.uniform(bk, (1, output_dim), jnp.float32, -bound, bound)
    linear.append((w, b))
    bn = [(jnp.ones((1, hidden), jnp.float32), jnp.zeros((1, hidden), jnp.float32))
          for _ in range(num_layers)]
    return linear, bn


# Pure-JAX reference for verification
def reference_forward(x, linear_params, bn_params=None, *, use_batch_norm=True, eps=1e-5):
    h = x
    for i, (w, b) in enumerate(linear_params[:-1]):
        h = h @ w + b
        if use_batch_norm:
            mean = jnp.mean(h, axis=0, keepdims=True)
            var = jnp.mean((h - mean) ** 2, axis=0, keepdims=True)
            h = (h - mean) * jax.lax.rsqrt(var + eps)
            if bn_params is not None:
                g, bt = bn_params[i]
                h = h * g + bt
        h = jnp.maximum(h, 0.0)
    w, b = linear_params[-1]
    return h @ w + b


if __name__ == "__main__":
    # NNSettings(input_dim=4, num_neurons_per_layer=32, num_layers=2,
    #            output_dim=3, use_batch_norm=True)
    batch, input_dim, hidden, num_layers, output_dim = 8, 4, 32, 2, 3

    key = jax.random.PRNGKey(0)
    key, xk, pk = jax.random.split(key, 3)
    x = jax.random.normal(xk, (batch, input_dim), jnp.float32)
    linear_params, bn_params = make_params(pk, input_dim, hidden, num_layers, output_dim)

    # 1) Resident single-kernel BN path, f32 compute (tight check).
    out = jax.block_until_ready(
        voronoi_forward(x, linear_params, bn_params, use_batch_norm=True,
                        compute_dtype=jnp.float32))
    ref = reference_forward(x, linear_params, bn_params, use_batch_norm=True)
    assert out.shape == (batch, output_dim)
    assert jnp.allclose(out, ref, atol=1e-3, rtol=1e-3), "f32 BN (resident) mismatch"

    # 2) bf16 MXU configuration.
    out_bf16 = jax.block_until_ready(
        voronoi_forward(x, linear_params, bn_params, use_batch_norm=True,
                        compute_dtype=jnp.bfloat16))
    assert jnp.allclose(out_bf16, ref, atol=1e-1, rtol=1e-1), "bf16 BN mismatch"

    # 3) Forced tiled BN path: multi-step grid, ragged last tile, partial stats.
    key, xk2 = jax.random.split(key)
    x40 = jax.random.normal(xk2, (40, input_dim), jnp.float32)
    out40 = jax.block_until_ready(
        voronoi_forward(x40, linear_params, bn_params, use_batch_norm=True,
                        compute_dtype=jnp.float32, force_tiled=True, tb_max=16))
    ref40 = reference_forward(x40, linear_params, bn_params, use_batch_norm=True)
    assert out40.shape == (40, output_dim)
    assert jnp.allclose(out40, ref40, atol=1e-3, rtol=1e-3), "tiled BN mismatch"

    # 4) Non-trivial BatchNorm affine (gamma/beta).
    key, gk = jax.random.split(key)
    bn_affine = []
    for _ in range(num_layers):
        gk, k1, k2 = jax.random.split(gk, 3)
        bn_affine.append((1.0 + 0.1 * jax.random.normal(k1, (1, hidden), jnp.float32),
                          0.1 * jax.random.normal(k2, (1, hidden), jnp.float32)))
    out_aff = jax.block_until_ready(
        voronoi_forward(x, linear_params, bn_affine, use_batch_norm=True,
                        compute_dtype=jnp.float32))
    ref_aff = reference_forward(x, linear_params, bn_affine, use_batch_norm=True)
    assert jnp.allclose(out_aff, ref_aff, atol=1e-3, rtol=1e-3), "affine BN mismatch"

    # 5) No-BatchNorm fused path, ragged batch (padding + slicing).
    key, xk3 = jax.random.split(key)
    x13 = jax.random.normal(xk3, (13, input_dim), jnp.float32)
    out13 = jax.block_until_ready(
        voronoi_forward(x13, linear_params, None, use_batch_norm=False,
                        compute_dtype=jnp.float32))
    ref13 = reference_forward(x13, linear_params, None, use_batch_norm=False)
    assert out13.shape == (13, output_dim)
    assert jnp.allclose(out13, ref13, atol=1e-3, rtol=1e-3), "no-BN mismatch"

    print("KERNEL_OK")
</pallas_src>

<mosaic_0001>
module attributes {stable_mosaic.version = 11 : i64} {
  func.func @_resident_bn_kernel(%arg0: i32, %arg1: memref<8x4xf32, #tpu.memory_space<vmem>>, %arg2: memref<4x32xf32, #tpu.memory_space<vmem>>, %arg3: memref<1x32xf32, #tpu.memory_space<vmem>>, %arg4: memref<1x32xf32, #tpu.memory_space<vmem>>, %arg5: memref<32x32xf32, #tpu.memory_space<vmem>>, %arg6: memref<1x32xf32, #tpu.memory_space<vmem>>, %arg7: memref<1x32xf32, #tpu.memory_space<vmem>>, %arg8: memref<32x3xf32, #tpu.memory_space<vmem>>, %arg9: memref<1x3xf32, #tpu.memory_space<vmem>>, %arg10: memref<8x3xf32, #tpu.memory_space<vmem>>) attributes {dimension_semantics = [#tpu.dimension_semantics<arbitrary>], iteration_bounds = array<i64: 1>, scalar_prefetch = 0 : i64, scratch_operands = 0 : i64, tpu.core_type = #tpu.core_type<tc>, window_params = [{pipeline_mode = #tpu.pipeline_mode<synchronous>, transform_indices = @transform_0, window_bounds = array<i64: 8, 4>}, {pipeline_mode = #tpu.pipeline_mode<synchronous>, transform_indices = @transform_1, window_bounds = array<i64: 4, 32>}, {pipeline_mode = #tpu.pipeline_mode<synchronous>, transform_indices = @transform_2, window_bounds = array<i64: 1, 32>}, {pipeline_mode = #tpu.pipeline_mode<synchronous>, transform_indices = @transform_3, window_bounds = array<i64: 1, 32>}, {pipeline_mode = #tpu.pipeline_mode<synchronous>, transform_indices = @transform_4, window_bounds = array<i64: 32, 32>}, {pipeline_mode = #tpu.pipeline_mode<synchronous>, transform_indices = @transform_5, window_bounds = array<i64: 1, 32>}, {pipeline_mode = #tpu.pipeline_mode<synchronous>, transform_indices = @transform_6, window_bounds = array<i64: 1, 32>}, {pipeline_mode = #tpu.pipeline_mode<synchronous>, transform_indices = @transform_7, window_bounds = array<i64: 32, 3>}, {pipeline_mode = #tpu.pipeline_mode<synchronous>, transform_indices = @transform_8, window_bounds = array<i64: 1, 3>}, {pipeline_mode = #tpu.pipeline_mode<synchronous>, transform_indices = @transform_9, window_bounds = array<i64: 8, 3>}]} {
    %c0 = arith.constant 0 : index
    %c0_0 = arith.constant 0 : index
    %0 = vector.load %arg1[%c0, %c0_0] : memref<8x4xf32, #tpu.memory_space<vmem>>, vector<8x4xf32>
    %c0_1 = arith.constant 0 : index
    %c0_2 = arith.constant 0 : index
    %1 = vector.load %arg2[%c0_1, %c0_2] : memref<4x32xf32, #tpu.memory_space<vmem>>, vector<4x32xf32>
    %cst = arith.constant dense<0.000000e+00> : vector<8x32xf32>
    %2 = tpu.matmul %0, %1, %cst {dimension_numbers = #tpu.dot_dimension_numbers<[1], [0], [0], [1], [0, 0, 1, 1], [], []>} : vector<8x4xf32>, vector<4x32xf32>, vector<8x32xf32> -> vector<8x32xf32>
    %cst_3 = arith.constant dense<0.000000e+00> : vector<32xf32>
    %3 = vector.multi_reduction <add>, %2, %cst_3 [0] : vector<8x32xf32> to vector<32xf32>
    %4 = vector.shape_cast %3 : vector<32xf32> to vector<1x32xf32>
    %cst_4 = arith.constant 1.250000e-01 : f32
    %5 = vector.broadcast %cst_4 : f32 to vector<1x32xf32>
    %6 = arith.mulf %4, %5 : vector<1x32xf32>
    %7 = arith.mulf %2, %2 : vector<8x32xf32>
    %cst_5 = arith.constant dense<0.000000e+00> : vector<32xf32>
    %8 = vector.multi_reduction <add>, %7, %cst_5 [0] : vector<8x32xf32> to vector<32xf32>
    %9 = vector.shape_cast %8 : vector<32xf32> to vector<1x32xf32>
    %cst_6 = arith.constant 1.250000e-01 : f32
    %10 = vector.broadcast %cst_6 : f32 to vector<1x32xf32>
    %11 = arith.mulf %9, %10 : vector<1x32xf32>
    %12 = arith.mulf %6, %6 : vector<1x32xf32>
    %13 = arith.subf %11, %12 : vector<1x32xf32>
    %cst_7 = arith.constant 0.000000e+00 : f32
    %14 = vector.broadcast %cst_7 : f32 to vector<1x32xf32>
    %15 = arith.maximumf %13, %14 : vector<1x32xf32>
    %cst_8 = arith.constant 9.99999974E-6 : f32
    %16 = vector.broadcast %cst_8 : f32 to vector<1x32xf32>
    %17 = arith.addf %15, %16 : vector<1x32xf32>
    %18 = math.rsqrt %17 : vector<1x32xf32>
    %c0_9 = arith.constant 0 : index
    %c0_10 = arith.constant 0 : index
    %19 = vector.load %arg3[%c0_9, %c0_10] : memref<1x32xf32, #tpu.memory_space<vmem>>, vector<1x32xf32>
    %20 = arith.mulf %19, %18 : vector<1x32xf32>
    %c0_11 = arith.constant 0 : index
    %c0_12 = arith.constant 0 : index
    %21 = vector.load %arg4[%c0_11, %c0_12] : memref<1x32xf32, #tpu.memory_space<vmem>>, vector<1x32xf32>
    %22 = arith.mulf %6, %20 : vector<1x32xf32>
    %23 = arith.subf %21, %22 : vector<1x32xf32>
    %24 = vector.broadcast %20 : vector<1x32xf32> to vector<8x32xf32>
    %25 = arith.mulf %2, %24 : vector<8x32xf32>
    %26 = vector.broadcast %23 : vector<1x32xf32> to vector<8x32xf32>
    %27 = arith.addf %25, %26 : vector<8x32xf32>
    %cst_13 = arith.constant 0.000000e+00 : f32
    %28 = vector.broadcast %cst_13 : f32 to vector<8x32xf32>
    %29 = arith.maximumf %27, %28 : vector<8x32xf32>
    %c0_14 = arith.constant 0 : index
    %c0_15 = arith.constant 0 : index
    %30 = vector.load %arg5[%c0_14, %c0_15] : memref<32x32xf32, #tpu.memory_space<vmem>>, vector<32x32xf32>
    %cst_16 = arith.constant dense<0.000000e+00> : vector<8x32xf32>
    %31 = tpu.matmul %29, %30, %cst_16 {dimension_numbers = #tpu.dot_dimension_numbers<[1], [0], [0], [1], [0, 0, 1, 1], [], []>} : vector<8x32xf32>, vector<32x32xf32>, vector<8x32xf32> -> vector<8x32xf32>
    %cst_17 = arith.constant dense<0.000000e+00> : vector<32xf32>
    %32 = vector.multi_reduction <add>, %31, %cst_17 [0] : vector<8x32xf32> to vector<32xf32>
    %33 = vector.shape_cast %32 : vector<32xf32> to vector<1x32xf32>
    %cst_18 = arith.constant 1.250000e-01 : f32
    %34 = vector.broadcast %cst_18 : f32 to vector<1x32xf32>
    %35 = arith.mulf %33, %34 : vector<1x32xf32>
    %36 = arith.mulf %31, %31 : vector<8x32xf32>
    %cst_19 = arith.constant dense<0.000000e+00> : vector<32xf32>
    %37 = vector.multi_reduction <add>, %36, %cst_19 [0] : vector<8x32xf32> to vector<32xf32>
    %38 = vector.shape_cast %37 : vector<32xf32> to vector<1x32xf32>
    %cst_20 = arith.constant 1.250000e-01 : f32
    %39 = vector.broadcast %cst_20 : f32 to vector<1x32xf32>
    %40 = arith.mulf %38, %39 : vector<1x32xf32>
    %41 = arith.mulf %35, %35 : vector<1x32xf32>
    %42 = arith.subf %40, %41 : vector<1x32xf32>
    %cst_21 = arith.constant 0.000000e+00 : f32
    %43 = vector.broadcast %cst_21 : f32 to vector<1x32xf32>
    %44 = arith.maximumf %42, %43 : vector<1x32xf32>
    %cst_22 = arith.constant 9.99999974E-6 : f32
    %45 = vector.broadcast %cst_22 : f32 to vector<1x32xf32>
    %46 = arith.addf %44, %45 : vector<1x32xf32>
    %47 = math.rsqrt %46 : vector<1x32xf32>
    %c0_23 = arith.constant 0 : index
    %c0_24 = arith.constant 0 : index
    %48 = vector.load %arg6[%c0_23, %c0_24] : memref<1x32xf32, #tpu.memory_space<vmem>>, vector<1x32xf32>
    %49 = arith.mulf %48, %47 : vector<1x32xf32>
    %c0_25 = arith.constant 0 : index
    %c0_26 = arith.constant 0 : index
    %50 = vector.load %arg7[%c0_25, %c0_26] : memref<1x32xf32, #tpu.memory_space<vmem>>, vector<1x32xf32>
    %51 = arith.mulf %35, %49 : vector<1x32xf32>
    %52 = arith.subf %50, %51 : vector<1x32xf32>
    %53 = vector.broadcast %49 : vector<1x32xf32> to vector<8x32xf32>
    %54 = arith.mulf %31, %53 : vector<8x32xf32>
    %55 = vector.broadcast %52 : vector<1x32xf32> to vector<8x32xf32>
    %56 = arith.addf %54, %55 : vector<8x32xf32>
    %cst_27 = arith.constant 0.000000e+00 : f32
    %57 = vector.broadcast %cst_27 : f32 to vector<8x32xf32>
    %58 = arith.maximumf %56, %57 : vector<8x32xf32>
    %c0_28 = arith.constant 0 : index
    %c0_29 = arith.constant 0 : index
    %59 = vector.load %arg8[%c0_28, %c0_29] : memref<32x3xf32, #tpu.memory_space<vmem>>, vector<32x3xf32>
    %cst_30 = arith.constant dense<0.000000e+00> : vector<8x3xf32>
    %60 = tpu.matmul %58, %59, %cst_30 {dimension_numbers = #tpu.dot_dimension_numbers<[1], [0], [0], [1], [0, 0, 1, 1], [], []>} : vector<8x32xf32>, vector<32x3xf32>, vector<8x3xf32> -> vector<8x3xf32>
    %c0_31 = arith.constant 0 : index
    %c0_32 = arith.constant 0 : index
    %61 = vector.load %arg9[%c0_31, %c0_32] : memref<1x3xf32, #tpu.memory_space<vmem>>, vector<1x3xf32>
    %62 = vector.broadcast %61 : vector<1x3xf32> to vector<8x3xf32>
    %63 = arith.addf %60, %62 : vector<8x3xf32>
    %c0_33 = arith.constant 0 : index
    %c0_34 = arith.constant 0 : index
    %64 = vector.load %arg10[%c0_33, %c0_34] : memref<8x3xf32, #tpu.memory_space<vmem>>, vector<8x3xf32>
    tpu.vector_store %arg10[%c0_33, %c0_34], %63 {strides = array<i32>} : memref<8x3xf32, #tpu.memory_space<vmem>>, vector<8x3xf32>,
    return
  }
  func.func @transform_0(%arg0: i32) -> (i32, i32) {
    %c0_i32 = arith.constant 0 : i32
    %c0_i32_0 = arith.constant 0 : i32
    %c0_i32_1 = arith.constant 0 : i32
    return %c0_i32, %c0_i32_0 : i32, i32
  }
  func.func @transform_1(%arg0: i32) -> (i32, i32) {
    %c0_i32 = arith.constant 0 : i32
    %c0_i32_0 = arith.constant 0 : i32
    %c0_i32_1 = arith.constant 0 : i32
    return %c0_i32, %c0_i32_0 : i32, i32
  }
  func.func @transform_2(%arg0: i32) -> (i32, i32) {
    %c0_i32 = arith.constant 0 : i32
    %c0_i32_0 = arith.constant 0 : i32
    %c0_i32_1 = arith.constant 0 : i32
    return %c0_i32, %c0_i32_0 : i32, i32
  }
  func.func @transform_3(%arg0: i32) -> (i32, i32) {
    %c0_i32 = arith.constant 0 : i32
    %c0_i32_0 = arith.constant 0 : i32
    %c0_i32_1 = arith.constant 0 : i32
    return %c0_i32, %c0_i32_0 : i32, i32
  }
  func.func @transform_4(%arg0: i32) -> (i32, i32) {
    %c0_i32 = arith.constant 0 : i32
    %c0_i32_0 = arith.constant 0 : i32
    %c0_i32_1 = arith.constant 0 : i32
    return %c0_i32, %c0_i32_0 : i32, i32
  }
  func.func @transform_5(%arg0: i32) -> (i32, i32) {
    %c0_i32 = arith.constant 0 : i32
    %c0_i32_0 = arith.constant 0 : i32
    %c0_i32_1 = arith.constant 0 : i32
    return %c0_i32, %c0_i32_0 : i32, i32
  }
  func.func @transform_6(%arg0: i32) -> (i32, i32) {
    %c0_i32 = arith.constant 0 : i32
    %c0_i32_0 = arith.constant 0 : i32
    %c0_i32_1 = arith.constant 0 : i32
    return %c0_i32, %c0_i32_0 : i32, i32
  }
  func.func @transform_7(%arg0: i32) -> (i32, i32) {
    %c0_i32 = arith.constant 0 : i32
    %c0_i32_0 = arith.constant 0 : i32
    %c0_i32_1 = arith.constant 0 : i32
    return %c0_i32, %c0_i32_0 : i32, i32
  }
  func.func @transform_8(%arg0: i32) -> (i32, i32) {
    %c0_i32 = arith.constant 0 : i32
    %c0_i32_0 = arith.constant 0 : i32
    %c0_i32_1 = arith.constant 0 : i32
    return %c0_i32, %c0_i32_0 : i32, i32
  }
  func.func @transform_9(%arg0: i32) -> (i32, i32) {
    %c0_i32 = arith.constant 0 : i32
    %c0_i32_0 = arith.constant 0 : i32
    %c0_i32_1 = arith.constant 0 : i32
    return %c0_i32, %c0_i32_0 : i32, i32
  }
}

</mosaic_0001>

<bundles_post_ra>
// kernel: tpu_custom_call.1
= control target key start
LH: loop header
LB: loop body
LE: loop exit
PB: predicated region body
PF: predicated region fallthrough
CT: control target
= control target key end

     0   :  { %vm38_vm0 = vcmask 1043456   ;;  %vm34_vm1 = vcmask 31744   ;;  %v427_v0 = vmov 0.0   ;;  %vm428_vm2 = vmmov 0   ;;  %s534_s1 = inlined_call_operand.vmem [shape: f32[4,32], index: 1, kind: input, shape index: {}]   ;;  %s535_s0 = inlined_call_operand.vmem [shape: f32[8,4], index: 0, kind: input, shape index: {}]   ;;  %s536_s4 = inlined_call_operand.vmem [shape: f32[32,32], index: 4, kind: input, shape index: {}]   ;;  %s537_s2 = inlined_call_operand.vmem [shape: f32[1,32], index: 2, kind: input, shape index: {}]   ;;  %s538_s3 = inlined_call_operand.vmem [shape: f32[1,32], index: 3, kind: input, shape index: {}]   ;;  %s539_s7 = inlined_call_operand.vmem [shape: f32[32,3], index: 7, kind: input, shape index: {}]   ;;  %s540_s5 = inlined_call_operand.vmem [shape: f32[1,32], index: 5, kind: input, shape index: {}]   ;;  %s541_s6 = inlined_call_operand.vmem [shape: f32[1,32], index: 6, kind: input, shape index: {}]   ;;  %s542_s8 = inlined_call_operand.vmem [shape: f32[1,3], index: 8, kind: input, shape index: {}]   ;;  %s543_s9 = inlined_call_operand.vmem [shape: f32[8,3], index: 9, kind: output, shape index: {}]  }
   0x1   :  { %381 = vmatprep.subr.mxu0 %v427_v0  ;;  %v33_v1 = vld [vmem:[%s534_s1] sm:$0xf]  ;;  %383 = vmatprep.mubr.msk.f32.mxu0 %vm428_vm2, %v427_v0  ;;  %v156_v4 = vld [vmem:[%s536_s4 + $0x8] sm:$0xff]  ;;  %v429_v6 = vmov 0.0|0.0   ;;  %v157_v7 = vld [vmem:[%s536_s4 + $0x10] sm:$0xff]  ;;  %vm112_vm3 = vcmask 261120   ;;  %v141_v33 = vlaneseq }
   0x2   :  { %v32_v2 = vld [vmem:[%s535_s0] sm:$0xff]  ;;  %382 = vmatpush3.msk.msra.mxu0 %vm38_vm0, %v33_v1  ;;  %394 = vmatprep.mubr.msk.f32.mxu1 %vm428_vm2, %v427_v0  ;;  %v158_v8 = vld [vmem:[%s536_s4 + $0x18] sm:$0xff]  ;;  %v275_v48 = vld [vmem:[%s539_s7 + $0x8] sm:$0xff]  ;;  %vm358_vm4 = vcmask 23552  }
   0x3   :  { %384 = vmatmul.mubr.msk.f32.vlgmr.msra.gmra.mrb[0].mxu0 %vm34_vm1, %v32_v2  ;;  %v155_v3 = vld [vmem:[%s536_s4] sm:$0xff]  ;;  %408 = vmatprep.subr.bf16.mxu1 %v429_v6  ;;  %v412_v9 = vpack.c.bf16 %v158_v8, %v157_v7  ;;  %v142_v34 = vshrl.u32 %v141_v33, 7  ;;  %v276_v50 = vld [vmem:[%s539_s7 + $0x10] sm:$0xff]  ;;  %v277_v51 = vld [vmem:[%s539_s7 + $0x18] sm:$0xff] }
   0x4   :  { %405 = vmatprep.mubr.msk.f32.mxu0 %vm428_vm2, %v427_v0  ;;  %v409_v5 = vpack.c.bf16 %v156_v4, %v155_v3  ;;  %414 = vmatprep.subr.bf16.mxu0 %v429_v6  ;;  %v135_v35 = vld [vmem:[%s537_s2] sm:$0x1]  ;;  %v418_v52 = vpack.c.bf16 %v277_v51, %v276_v50 }
   0x5   :  { %v143_v36 = vsub.s32 0, %v142_v34  ;;  %v137_v39 = vld [vmem:[%s538_s3] sm:$0x1] }
   0x6   :  { %410 = vmatpush3.bf16.msra.mxu1 %v409_v5  ;;  %v274_v47 = vld [vmem:[%s539_s7] sm:$0xff] }
   0x7   :  { %411 = vmatprep.subr.bf16.mxu1 %v429_v6  ;;  %v415_v49 = vpack.c.bf16 %v275_v48, %v274_v47 }
   0x9   :  { %416 = vmatpush3.bf16.msra.mxu0 %v415_v49 }
   0xa   :  { %413 = vmatpush3.bf16.msra.mxu1 %v412_v9  ;;  %417 = vmatprep.subr.bf16.mxu0 %v429_v6 }
   0xd   :  { %419 = vmatpush3.bf16.msra.mxu0 %v418_v52 }
  0xd6   :  { %v108_v10 = vpop.f32.mrb[0].mxu0 }
  0xd7   :  { %v113_v11 = vsel %vm112_vm3, %v108_v10, 0.0  ;;  %v121_v12 = vmul.f32 %v108_v10, %v108_v10  ;;  %v385_v13 = vpop.f32.mrb[1].mxu0 }
  0xd8   :  { %v114_v14 = vrot.slane %v113_v11, 4 }
  0xd9   :  { %v122_v15 = vsel %vm112_vm3, %v121_v12, 0.0  ;;  %v254_v12 = vld [vmem:[%s540_s5] sm:$0x1] }
  0xda   :  { %v115_v16 = vadd.f32 %v114_v14, %v113_v11  ;;  %v123_v17 = vrot.slane %v122_v15, 4 }
  0xdc   :  { %v116_v18 = vrot.slane %v115_v16, 2  ;;  %v124_v19 = vadd.f32 %v123_v17, %v122_v15  ;;  %v256_v15 = vld [vmem:[%s541_s6] sm:$0x1] }
  0xde   :  { %v117_v20 = vadd.f32 %v116_v18, %v115_v16  ;;  %v125_v21 = vrot.slane %v124_v19, 2 }
  0xe0   :  { %v118_v22 = vrot.slane %v117_v20, 1  ;;  %v126_v23 = vadd.f32 %v125_v21, %v124_v19 }
  0xe2   :  { %v119_v24 = vadd.f32 %v118_v22, %v117_v20  ;;  %v127_v25 = vrot.slane %v126_v23, 1 }
  0xe4   :  { %v120_v26 = vmul.f32 0.125, %v119_v24  ;;  %v128_v27 = vadd.f32 %v127_v25, %v126_v23  ;;  %v367_v23 = vld [vmem:[%s542_s8] ss:$0 sm:$0xff] }
  0xe6   :  { %v129_v28 = vmul.f32 0.125, %v128_v27  ;;  %v130_v29 = vmul.f32 %v120_v26, %v120_v26 }
  0xe8   :  { %v131_v30 = vsub.f32 %v129_v28, %v130_v29 }
  0xea   :  { %v132_v31 = vmax.f32 %v131_v30, 0.0 }
  0xec   :  { %v133_v32 = vadd.f32 1e-05, %v132_v31 }
  0xee   :  { %423 = vrsqrt.f32 %v133_v32 }
  0xf8   :  { %v424_v37 = vpop.eup %423 }
  0xf9   :  { %v136_v38 = vmul.f32 %v424_v37, %v135_v35 }
  0xfb   :  { %v138_v40 = vmul.f32 %v136_v38, %v120_v26  ;;  %v144_v41 = vrot.slane %v136_v38, %v143_v36 }
  0xfd   :  { %v139_v42 = vsub.f32 %v137_v39, %v138_v40  ;;  %v146_v43 = vmul.f32 %v144_v41, %v108_v10 }
  0xff   :  { %v151_v44 = vrot.slane %v139_v42, %v143_v36 }
 0x101   :  { %v153_v45 = vadd.f32 %v151_v44, %v146_v43 }
 0x103   :  { %v154_v46 = vmax.f32 %v153_v45, 0.0 }
 0x105   :  { %395 = vmatmul.mubr.msk.f32.vlgmr.msra.gmra.mrb[0].mxu1 %vm112_vm3, %v154_v46 }
 0x1d8   :  { %v228_v53 = vpop.f32.mrb[0].mxu1 }
 0x1d9   :  { %v232_v54 = vsel %vm112_vm3, %v228_v53, 0.0  ;;  %v240_v55 = vmul.f32 %v228_v53, %v228_v53  ;;  %v396_v56 = vpop.f32.mrb[1].mxu1 }
 0x1da   :  { %v233_v57 = vrot.slane %v232_v54, 4 }
 0x1db   :  { %v241_v58 = vsel %vm112_vm3, %v240_v55, 0.0 }
 0x1dc   :  { %v234_v59 = vadd.f32 %v233_v57, %v232_v54  ;;  %v242_v60 = vrot.slane %v241_v58, 4 }
 0x1de   :  { %v235_v61 = vrot.slane %v234_v59, 2  ;;  %v243_v62 = vadd.f32 %v242_v60, %v241_v58 }
 0x1e0   :  { %v236_v63 = vadd.f32 %v235_v61, %v234_v59  ;;  %v244_v0 = vrot.slane %v243_v62, 2 }
 0x1e2   :  { %v237_v1 = vrot.slane %v236_v63, 1  ;;  %v245_v2 = vadd.f32 %v244_v0, %v243_v62 }
 0x1e4   :  { %v238_v3 = vadd.f32 %v237_v1, %v236_v63  ;;  %v246_v4 = vrot.slane %v245_v2, 1 }
 0x1e6   :  { %v239_v5 = vmul.f32 0.125, %v238_v3  ;;  %v247_v6 = vadd.f32 %v246_v4, %v245_v2 }
 0x1e8   :  { %v248_v7 = vmul.f32 0.125, %v247_v6  ;;  %v249_v8 = vmul.f32 %v239_v5, %v239_v5 }
 0x1ea   :  { %v250_v9 = vsub.f32 %v248_v7, %v249_v8 }
 0x1ec   :  { %v251_v10 = vmax.f32 %v250_v9, 0.0 }
 0x1ee   :  { %v252_v11 = vadd.f32 1e-05, %v251_v10 }
 0x1f0   :  { %425 = vrsqrt.f32 %v252_v11 }
 0x1fa   :  { %v426_v13 = vpop.eup %425 }
 0x1fb   :  { %v255_v14 = vmul.f32 %v426_v13, %v254_v12 }
 0x1fd   :  { %v257_v16 = vmul.f32 %v255_v14, %v239_v5  ;;  %v263_v17 = vrot.slane %v255_v14, %v143_v36 }
 0x1ff   :  { %v258_v18 = vsub.f32 %v256_v15, %v257_v16  ;;  %v265_v19 = vmul.f32 %v263_v17, %v228_v53 }
 0x201   :  { %v270_v20 = vrot.slane %v258_v18, %v143_v36 }
 0x203   :  { %v272_v21 = vadd.f32 %v270_v20, %v265_v19 }
 0x205   :  { %v273_v22 = vmax.f32 %v272_v21, 0.0 }
 0x207   :  { %406 = vmatmul.mubr.msk.f32.vlgmr.msra.gmra.mrb[2].mxu0 %vm112_vm3, %v273_v22 }
 0x2da   :  { %v354_v24 = vpop.f32.mrb[2].mxu0 }
 0x2db   :  { %v355_v25 = vadd.f32 %v367_v23, %v354_v24  ;;  %v407_v26 = vpop.f32.mrb[3].mxu0 }
 0x2dd   :  { %359 = vst.msk [vmem:[%s543_s9] sm:$0xff] %vm358_vm4, %v355_v25 }

</bundles_post_ra>
